<compile_context>
chip_gen: v7x
topology: tpu7x:2x2x1
jax: 0.10.0
libtpu: 0.0.40
codegen_flags: <defaults>
</compile_context>

<pallas_src>
import jax
import jax.numpy as jnp
from jax.experimental import pallas as pl
from jax.experimental.pallas import tpu as pltpu


# ---------------------------------------------------------------------------
# Small helpers
# ---------------------------------------------------------------------------
def _round_up(n, m):
    return (n + m - 1) // m * m


def _cdiv(a, b):
    return (a + b - 1) // b


def _pad_axis(a, axis, target):
    pad = target - a.shape[axis]
    if pad == 0:
        return a
    widths = [(0, 0)] * a.ndim
    widths[axis] = (0, pad)
    return jnp.pad(a, widths)


def _device_kind():
    try:
        return jax.devices()[0].device_kind.lower()
    except Exception:
        return ""


def _vmem_capacity_bytes(kind):
    try:
        info = pltpu.get_tpu_info()
        cap = int(getattr(info, "vmem_capacity_bytes", 0))
        if cap > 0:
            return cap
    except Exception:
        pass
    if "v7" in kind or "7x" in kind:
        return 64 << 20           # v7x: 64 MiB per TensorCore
    return 128 << 20              # v5e / v6e


def _default_tiled_tm(kind):
    # Weight-streaming roofline for the d_ff-tiled path: per j step the two
    # streamed weight tiles cost ~2*d_model*t_ff*itemsize HBM bytes against
    # 4*tm*d_model*t_ff MXU flops, so tm must be large enough that the MXU
    # (not HBM) is the bottleneck.
    if "v5" in kind:
        return 512
    if "v7" in kind or "7x" in kind:
        return 512                # 3.2 TB/s HBM
    return 1024                   # v6e (~1.3-1.4 TB/s HBM) / unknown


_PIPELINE_MODE_CACHE = {}


def _pipeline_mode_ok(nbuf):
    """One-time (per process) capability probe for pl.Buffered(nbuf)."""
    if nbuf in _PIPELINE_MODE_CACHE:
        return _PIPELINE_MODE_CACHE[nbuf]
    ok = hasattr(pl, "Buffered")
    if ok:
        try:
            def _probe(x_ref, o_ref):
                o_ref[...] = x_ref[...] + 1.0

            out = pl.pallas_call(
                _probe,
                out_shape=jax.ShapeDtypeStruct((16, 128), jnp.float32),
                grid=(2,),
                in_specs=[pl.BlockSpec((8, 128), lambda i: (0, 0),
                                       pipeline_mode=pl.Buffered(nbuf))],
                out_specs=pl.BlockSpec((8, 128), lambda i: (i, 0)),
            )(jnp.zeros((8, 128), jnp.float32))
            jax.block_until_ready(out)
        except Exception:
            ok = False
    _PIPELINE_MODE_CACHE[nbuf] = ok
    return ok


# ---------------------------------------------------------------------------
# Kernels
# ---------------------------------------------------------------------------
def ffn_kernel_resident(x_ref, w1_ref, b1_ref, w2_ref, b2_ref, o_ref):
    """W1/W2 fully resident in VMEM; single grid axis over token tiles."""
    x = x_ref[...].astype(w1_ref.dtype)                 # MXU compute dtype
    h = jnp.dot(x, w1_ref[...], preferred_element_type=jnp.float32) + b1_ref[...]
    h = jnp.maximum(h, 0.0)                             # ReLU (f32)
    # TODO(synk): training-mode dropout(p=0.2) via pltpu PRNG; eval == identity.
    h = h.astype(w2_ref.dtype)
    y = jnp.dot(h, w2_ref[...], preferred_element_type=jnp.float32) + b2_ref[...]
    o_ref[...] = y.astype(o_ref.dtype)


def ffn_kernel_dff_tiled(x_ref, w1_ref, b1_ref, w2_ref, b2_ref, o_ref, acc_ref):
    """d_ff-tiled reduction: y = sum_j relu(x @ W1[:, j] + b1[j]) @ W2[j, :] + b2."""
    j = pl.program_id(1)

    @pl.when(j == 0)
    def _():
        acc_ref[...] = jnp.zeros_like(acc_ref)

    x = x_ref[...].astype(w1_ref.dtype)
    h = jnp.dot(x, w1_ref[...], preferred_element_type=jnp.float32) + b1_ref[...]
    h = jnp.maximum(h, 0.0).astype(w2_ref.dtype)
    acc_ref[...] += jnp.dot(h, w2_ref[...], preferred_element_type=jnp.float32)

    @pl.when(j == pl.num_programs(1) - 1)
    def _():
        o_ref[...] = (acc_ref[...] + b2_ref[...]).astype(o_ref.dtype)


# ---------------------------------------------------------------------------
# Wrapper
# ---------------------------------------------------------------------------
def positionwise_feed_forward(x, w1, b1, w2, b2, *, tm=None, t_ff=None,
                              compute_dtype=jnp.bfloat16):
    """x: (B, S, d_model). w1: (d_model, d_ff) (torch weight transposed),
    b1: (d_ff,), w2: (d_ff, d_model), b2: (d_model,).

    tm:            token-row tile; default is path/chip dependent (512 for
                   <=16-bit compute on the resident path; 512-1024 on the
                   d_ff-tiled path per the weight-streaming roofline).
    t_ff:          if set, use the d_ff-tiled f32-accumulator path with this
                   hidden tile (rounded up to a multiple of 256).  Auto-enabled
                   when the resident weights do not fit the chip's VMEM budget.
    compute_dtype: dtype fed to the MXU (default bfloat16 for full MXU rate);
                   accumulation and bias adds stay in f32.
    """
    B, S, d_model = x.shape
    d_ff = w1.shape[1]
    assert w1.shape == (d_model, d_ff) and w2.shape == (d_ff, d_model)
    assert b1.shape == (d_ff,) and b2.shape == (d_model,)

    compute_dtype = jnp.dtype(compute_dtype)
    out_dtype = x.dtype
    itemsize = compute_dtype.itemsize
    x_itemsize = jnp.dtype(x.dtype).itemsize
    out_itemsize = jnp.dtype(out_dtype).itemsize
    M = B * S

    kind = _device_kind()
    vmem_cap = _vmem_capacity_bytes(kind)
    vmem_budget = vmem_cap - (16 << 20)        # headroom for Mosaic internal scratch

    # Feature dims -> multiples of 128 (lane-dense loads/stores, MXU-friendly;
    # free for real transformer widths, which are already multiples of 256).
    d_model_p = _round_up(d_model, 128)
    d_ff_p = _round_up(d_ff, 128)

    sb_ok = _pipeline_mode_ok(1)               # single-buffer resident weights
    deep_ok = _pipeline_mode_ok(3)             # deeper buffering for streamed weights

    # ---------------- path selection (resident vs d_ff-tiled) --------------
    w_bytes = 2 * d_model_p * d_ff_p * itemsize
    b_bytes = (d_ff_p + d_model_p) * 4
    wfac = 1 if sb_ok else 2                   # weight buffer count (VMEM only)

    def resident_need(t):
        return (wfac * (w_bytes + b_bytes)
                + 2 * t * d_model_p * (x_itemsize + out_itemsize)   # x/out tiles (x2 bufs)
                + t * d_model_p * itemsize                          # in-kernel x cast
                + t * d_ff_p * (4 + itemsize)                       # h (f32) + h cast
                + t * d_model_p * 4)                                # y (f32)

    res_tm = tm if tm is not None else (512 if itemsize <= 2 else 256)
    res_tm = max(8, _round_up(min(res_tm, _round_up(M, 8)), 8))
    while resident_need(res_tm) > vmem_budget and res_tm > 256:
        res_tm = max(256, _round_up(res_tm // 2, 8))

    use_tiled = (t_ff is not None) or (resident_need(res_tm) > vmem_budget)

    def ensure_two_m_tiles(t):
        # >=2 token tiles when M is big enough: the "parallel" grid axis then
        # feeds both of v7x's TensorCores (harmless on single-core chips).
        if M >= 512 and _cdiv(M, t) < 2:
            return max(256, _round_up(_cdiv(M, 2), 8))
        return t

    if not use_tiled:
        tm_eff = ensure_two_m_tiles(res_tm)
        grid = (_cdiv(M, tm_eff),)
        sb_kw = dict(pipeline_mode=pl.Buffered(1)) if sb_ok else {}
        in_specs = [
            pl.BlockSpec((tm_eff, d_model_p), lambda i: (i, 0)),
            pl.BlockSpec((d_model_p, d_ff_p), lambda i: (0, 0), **sb_kw),
            pl.BlockSpec((1, d_ff_p), lambda i: (0, 0), **sb_kw),
            pl.BlockSpec((d_ff_p, d_model_p), lambda i: (0, 0), **sb_kw),
            pl.BlockSpec((1, d_model_p), lambda i: (0, 0), **sb_kw),
        ]
        out_specs = pl.BlockSpec((tm_eff, d_model_p), lambda i: (i, 0))
        scratch_shapes = ()
        dim_sem = ("parallel",)
        kernel = ffn_kernel_resident
        need = resident_need(tm_eff)
        # Resident path: weights cross HBM exactly once.
        bytes_accessed = (M * d_model_p * (x_itemsize + out_itemsize)
                          + w_bytes + b_bytes)
    else:
        # t_ff: multiple of 256 (full 2x256x256 MXU pass on v6e/v7x, fine on
        # v5e); pad d_ff so t_ff divides it exactly (zero-padded W1 columns /
        # W2 rows contribute exactly 0), never collapsing t_ff to 128.
        if t_ff is None:
            t_ff = 512
        t_ff = max(256, _round_up(t_ff, 256))
        t_ff = min(t_ff, _round_up(d_ff, 256))
        d_ff_p = _round_up(d_ff, t_ff)
        n_ff = d_ff_p // t_ff
        w_bytes = 2 * d_model_p * d_ff_p * itemsize
        b_bytes = (d_ff_p + d_model_p) * 4

        use_deep = deep_ok and n_ff >= 3       # hide HBM jitter on weight streams
        wbuf = 3 if use_deep else 2

        def tiled_need(t):
            return (wbuf * 2 * d_model_p * t_ff * itemsize          # streamed W1/W2
                    + 2 * (t_ff + d_model_p) * 4                    # b1/b2 tiles
                    + 2 * t * d_model_p * (x_itemsize + out_itemsize)
                    + t * d_model_p * itemsize                      # x cast
                    + t * d_model_p * 4                             # acc scratch
                    + t * t_ff * (4 + itemsize))                    # h temps

        tm_t = tm if tm is not None else _default_tiled_tm(kind)
        tm_eff = max(8, _round_up(min(tm_t, _round_up(M, 8)), 8))
        while tiled_need(tm_eff) > vmem_budget and tm_eff > 256:
            tm_eff = max(256, _round_up(tm_eff // 2, 8))
        if "v7" in kind or "7x" in kind:
            tm_eff = ensure_two_m_tiles(tm_eff)

        n_m = _cdiv(M, tm_eff)
        grid = (n_m, n_ff)
        wkw = dict(pipeline_mode=pl.Buffered(3)) if use_deep else {}
        in_specs = [
            pl.BlockSpec((tm_eff, d_model_p), lambda i, j: (i, 0)),
            pl.BlockSpec((d_model_p, t_ff), lambda i, j: (0, j), **wkw),
            pl.BlockSpec((1, t_ff), lambda i, j: (0, j)),
            pl.BlockSpec((t_ff, d_model_p), lambda i, j: (j, 0), **wkw),
            pl.BlockSpec((1, d_model_p), lambda i, j: (0, 0)),
        ]
        out_specs = pl.BlockSpec((tm_eff, d_model_p), lambda i, j: (i, 0))
        scratch_shapes = (pltpu.VMEM((tm_eff, d_model_p), jnp.float32),)
        dim_sem = ("parallel", "arbitrary")
        kernel = ffn_kernel_dff_tiled
        need = tiled_need(tm_eff)
        # Tiled path re-streams W1/W2 once per token tile.
        bytes_accessed = (M * d_model_p * (x_itemsize + out_itemsize)
                          + n_m * w_bytes + b_bytes)

    vmem_limit = int(min(vmem_cap - (8 << 20), max(32 << 20, need + (4 << 20))))

    # ---------------- operand padding / cast --------------------------------
    # NOTE: in a real model store the weights pre-padded and pre-cast to
    # compute_dtype (or keep this wrapper under jit with the weights as
    # constants) so the pad/astype below fold away; they are no-ops when the
    # shapes/dtypes already match.  x is padded only along features (no token
    # padding) and cast to compute_dtype inside the kernel.
    x2d = _pad_axis(x.reshape(M, d_model), 1, d_model_p)
    w1_p = _pad_axis(_pad_axis(w1, 0, d_model_p), 1, d_ff_p).astype(compute_dtype)
    w2_p = _pad_axis(_pad_axis(w2, 0, d_ff_p), 1, d_model_p).astype(compute_dtype)
    b1_p = _pad_axis(b1.reshape(1, d_ff), 1, d_ff_p).astype(jnp.float32)
    b2_p = _pad_axis(b2.reshape(1, d_model), 1, d_model_p).astype(jnp.float32)

    cost = pl.CostEstimate(
        flops=4 * M * d_model_p * d_ff_p,          # two matmuls, 2 flops/MAC
        transcendentals=0,
        bytes_accessed=int(bytes_accessed),
    )

    out2d = pl.pallas_call(
        kernel,
        out_shape=jax.ShapeDtypeStruct((M, d_model_p), out_dtype),
        grid_spec=pltpu.PrefetchScalarGridSpec(
            num_scalar_prefetch=0,
            grid=grid,
            in_specs=in_specs,
            out_specs=out_specs,
            scratch_shapes=scratch_shapes,
        ),
        compiler_params=pltpu.CompilerParams(
            dimension_semantics=dim_sem,
            vmem_limit_bytes=vmem_limit,
        ),
        cost_estimate=cost,
    )(x2d, w1_p, b1_p, w2_p, b2_p)

    if d_model_p != d_model:
        out2d = out2d[:, :d_model]
    return out2d.reshape(B, S, d_model)


def init_params(key, d_model, d_ff, dtype=jnp.float32):
    """nn.Linear-style init: U(-1/sqrt(fan_in), 1/sqrt(fan_in)); W1 stored
    transposed, i.e. (d_model, d_ff)."""
    k1, k2, k3, k4 = jax.random.split(key, 4)
    lim1 = 1.0 / (d_model ** 0.5)
    lim2 = 1.0 / (d_ff ** 0.5)
    w1 = jax.random.uniform(k1, (d_model, d_ff), dtype, -lim1, lim1)
    b1 = jax.random.uniform(k2, (d_ff,), dtype, -lim1, lim1)
    w2 = jax.random.uniform(k3, (d_ff, d_model), dtype, -lim2, lim2)
    b2 = jax.random.uniform(k4, (d_model,), dtype, -lim2, lim2)
    return w1, b1, w2, b2


if __name__ == "__main__":
    key = jax.random.PRNGKey(0)
    B, S, d_model, d_ff = 2, 8, 64, 256

    kx, kp, kx2, kp2 = jax.random.split(key, 4)
    x = jax.random.normal(kx, (B, S, d_model), jnp.float32)
    w1, b1, w2, b2 = init_params(kp, d_model, d_ff)
    ref = jnp.maximum(x @ w1 + b1, 0.0) @ w2 + b2

    # 1) default path: bf16 MXU inputs, f32 accumulation, resident weights.
    out = jax.block_until_ready(positionwise_feed_forward(x, w1, b1, w2, b2))
    assert out.shape == (B, S, d_model)
    assert out.dtype == x.dtype
    assert jnp.allclose(out, ref, atol=5e-2, rtol=5e-2), "bf16 resident mismatch"

    # 2) f32 MXU inputs (tight check against the XLA reference).
    out32 = jax.block_until_ready(
        positionwise_feed_forward(x, w1, b1, w2, b2, compute_dtype=jnp.float32))
    assert jnp.allclose(out32, ref, atol=1e-4, rtol=1e-4), "f32 resident mismatch"

    # 3) d_ff-tiled accumulator path with a ragged M (partial boundary token tile).
    d_ff2 = 512
    w1b, b1b, w2b, b2b = init_params(kp2, d_model, d_ff2)
    x_r = jax.random.normal(kx2, (2, 9, d_model), jnp.float32)      # M = 18
    ref_r = jnp.maximum(x_r @ w1b + b1b, 0.0) @ w2b + b2b
    out_r = jax.block_until_ready(
        positionwise_feed_forward(x_r, w1b, b1b, w2b, b2b,
                                  tm=8, t_ff=256, compute_dtype=jnp.float32))
    assert out_r.shape == (2, 9, d_model)
    assert jnp.allclose(out_r, ref_r, atol=1e-4, rtol=1e-4), "d_ff-tiled mismatch"

    print("KERNEL_OK")
</pallas_src>

<mosaic_0001>
module attributes {stable_mosaic.version = 11 : i64} {
  func.func @_probe(%arg0: i32, %arg1: memref<8x128xf32, #tpu.memory_space<vmem>>, %arg2: memref<8x128xf32, #tpu.memory_space<vmem>>) attributes {dimension_semantics = [#tpu.dimension_semantics<arbitrary>], iteration_bounds = array<i64: 2>, scalar_prefetch = 0 : i64, scratch_operands = 0 : i64, tpu.core_type = #tpu.core_type<tc>, window_params = [{pipeline_mode = #tpu.pipeline_mode<synchronous>, transform_indices = @transform_0, window_bounds = array<i64: 8, 128>}, {transform_indices = @transform_1, window_bounds = array<i64: 8, 128>}]} {
    %c0 = arith.constant 0 : index
    %c0_0 = arith.constant 0 : index
    %0 = vector.load %arg1[%c0, %c0_0] : memref<8x128xf32, #tpu.memory_space<vmem>>, vector<8x128xf32>
    %cst = arith.constant 1.000000e+00 : f32
    %1 = vector.broadcast %cst : f32 to vector<8x128xf32>
    %2 = arith.addf %0, %1 : vector<8x128xf32>
    %c0_1 = arith.constant 0 : index
    %c0_2 = arith.constant 0 : index
    %3 = vector.load %arg2[%c0_1, %c0_2] : memref<8x128xf32, #tpu.memory_space<vmem>>, vector<8x128xf32>
    tpu.vector_store %arg2[%c0_1, %c0_2], %2 {strides = array<i32>} : memref<8x128xf32, #tpu.memory_space<vmem>>, vector<8x128xf32>,
    return
  }
  func.func @transform_0(%arg0: i32) -> (i32, i32) {
    %c0_i32 = arith.constant 0 : i32
    %c0_i32_0 = arith.constant 0 : i32
    %c0_i32_1 = arith.constant 0 : i32
    return %c0_i32, %c0_i32_0 : i32, i32
  }
  func.func @transform_1(%arg0: i32) -> (i32, i32) {
    %c0_i32 = arith.constant 0 : i32
    %c0_i32_0 = arith.constant 0 : i32
    return %arg0, %c0_i32 : i32, i32
  }
}

module attributes {stable_mosaic.version = 11 : i64} {
  func.func @_probe(%arg0: i32, %arg1: memref<8x128xf32, #tpu.memory_space<vmem>>, %arg2: memref<8x128xf32, #tpu.memory_space<vmem>>) attributes {dimension_semantics = [#tpu.dimension_semantics<arbitrary>], iteration_bounds = array<i64: 2>, scalar_prefetch = 0 : i64, scratch_operands = 0 : i64, tpu.core_type = #tpu.core_type<tc>, window_params = [{pipeline_mode = #tpu.pipeline_mode<synchronous>, transform_indices = @transform_0, window_bounds = array<i64: 8, 128>}, {transform_indices = @transform_1, window_bounds = array<i64: 8, 128>}]} {
    %c0 = arith.constant 0 : index
    %c0_0 = arith.constant 0 : index
    %0 = vector.load %arg1[%c0, %c0_0] : memref<8x128xf32, #tpu.memory_space<vmem>>, vector<8x128xf32>
    %cst = arith.constant 1.000000e+00 : f32
    %1 = vector.broadcast %cst : f32 to vector<8x128xf32>
    %2 = arith.addf %0, %1 : vector<8x128xf32>
    %c0_1 = arith.constant 0 : index
    %c0_2 = arith.constant 0 : index
    %3 = vector.load %arg2[%c0_1, %c0_2] : memref<8x128xf32, #tpu.memory_space<vmem>>, vector<8x128xf32>
    tpu.vector_store %arg2[%c0_1, %c0_2], %2 {strides = array<i32>} : memref<8x128xf32, #tpu.memory_space<vmem>>, vector<8x128xf32>,
    return
  }
  func.func @transform_0(%arg0: i32) -> (i32, i32) {
    %c0_i32 = arith.constant 0 : i32
    %c0_i32_0 = arith.constant 0 : i32
    %c0_i32_1 = arith.constant 0 : i32
    return %c0_i32, %c0_i32_0 : i32, i32
  }
  func.func @transform_1(%arg0: i32) -> (i32, i32) {
    %c0_i32 = arith.constant 0 : i32
    %c0_i32_0 = arith.constant 0 : i32
    return %arg0, %c0_i32 : i32, i32
  }
}

module attributes {stable_mosaic.version = 11 : i64} {
  func.func @ffn_kernel_resident(%arg0: i32, %arg1: memref<16x128xf32, #tpu.memory_space<vmem>>, %arg2: memref<128x256xbf16, #tpu.memory_space<vmem>>, %arg3: memref<1x256xf32, #tpu.memory_space<vmem>>, %arg4: memref<256x128xbf16, #tpu.memory_space<vmem>>, %arg5: memref<1x128xf32, #tpu.memory_space<vmem>>, %arg6: memref<16x128xf32, #tpu.memory_space<vmem>>) attributes {dimension_semantics = [#tpu.dimension_semantics<parallel>], iteration_bounds = array<i64: 1>, scalar_prefetch = 0 : i64, scratch_operands = 0 : i64, tpu.core_type = #tpu.core_type<tc>, window_params = [{transform_indices = @transform_0, window_bounds = array<i64: 16, 128>}, {pipeline_mode = #tpu.pipeline_mode<synchronous>, transform_indices = @transform_1, window_bounds = array<i64: 128, 256>}, {pipeline_mode = #tpu.pipeline_mode<synchronous>, transform_indices = @transform_2, window_bounds = array<i64: 1, 256>}, {pipeline_mode = #tpu.pipeline_mode<synchronous>, transform_indices = @transform_3, window_bounds = array<i64: 256, 128>}, {pipeline_mode = #tpu.pipeline_mode<synchronous>, transform_indices = @transform_4, window_bounds = array<i64: 1, 128>}, {transform_indices = @transform_5, window_bounds = array<i64: 16, 128>}]} {
    %c0 = arith.constant 0 : index
    %c0_0 = arith.constant 0 : index
    %0 = vector.load %arg1[%c0, %c0_0] : memref<16x128xf32, #tpu.memory_space<vmem>>, vector<16x128xf32>
    %1 = arith.truncf %0 : vector<16x128xf32> to vector<16x128xbf16>
    %c0_1 = arith.constant 0 : index
    %c0_2 = arith.constant 0 : index
    %2 = vector.load %arg2[%c0_1, %c0_2] : memref<128x256xbf16, #tpu.memory_space<vmem>>, vector<128x256xbf16>
    %cst = arith.constant dense<0.000000e+00> : vector<16x256xf32>
    %3 = tpu.matmul %1, %2, %cst {dimension_numbers = #tpu.dot_dimension_numbers<[1], [0], [0], [1], [0, 0, 1, 1], [], []>} : vector<16x128xbf16>, vector<128x256xbf16>, vector<16x256xf32> -> vector<16x256xf32>
    %c0_3 = arith.constant 0 : index
    %c0_4 = arith.constant 0 : index
    %4 = vector.load %arg3[%c0_3, %c0_4] : memref<1x256xf32, #tpu.memory_space<vmem>>, vector<1x256xf32>
    %5 = vector.broadcast %4 : vector<1x256xf32> to vector<16x256xf32>
    %6 = arith.addf %3, %5 : vector<16x256xf32>
    %cst_5 = arith.constant 0.000000e+00 : f32
    %7 = vector.broadcast %cst_5 : f32 to vector<16x256xf32>
    %8 = arith.maximumf %6, %7 : vector<16x256xf32>
    %9 = arith.truncf %8 : vector<16x256xf32> to vector<16x256xbf16>
    %c0_6 = arith.constant 0 : index
    %c0_7 = arith.constant 0 : index
    %10 = vector.load %arg4[%c0_6, %c0_7] : memref<256x128xbf16, #tpu.memory_space<vmem>>, vector<256x128xbf16>
    %cst_8 = arith.constant dense<0.000000e+00> : vector<16x128xf32>
    %11 = tpu.matmul %9, %10, %cst_8 {dimension_numbers = #tpu.dot_dimension_numbers<[1], [0], [0], [1], [0, 0, 1, 1], [], []>} : vector<16x256xbf16>, vector<256x128xbf16>, vector<16x128xf32> -> vector<16x128xf32>
    %c0_9 = arith.constant 0 : index
    %c0_10 = arith.constant 0 : index
    %12 = vector.load %arg5[%c0_9, %c0_10] : memref<1x128xf32, #tpu.memory_space<vmem>>, vector<1x128xf32>
    %13 = vector.broadcast %12 : vector<1x128xf32> to vector<16x128xf32>
    %14 = arith.addf %11, %13 : vector<16x128xf32>
    %c0_11 = arith.constant 0 : index
    %c0_12 = arith.constant 0 : index
    %15 = vector.load %arg6[%c0_11, %c0_12] : memref<16x128xf32, #tpu.memory_space<vmem>>, vector<16x128xf32>
    tpu.vector_store %arg6[%c0_11, %c0_12], %14 {strides = array<i32>} : memref<16x128xf32, #tpu.memory_space<vmem>>, vector<16x128xf32>,
    return
  }
  func.func @transform_0(%arg0: i32) -> (i32, i32) {
    %c0_i32 = arith.constant 0 : i32
    %c0_i32_0 = arith.constant 0 : i32
    return %arg0, %c0_i32 : i32, i32
  }
  func.func @transform_1(%arg0: i32) -> (i32, i32) {
    %c0_i32 = arith.constant 0 : i32
    %c0_i32_0 = arith.constant 0 : i32
    %c0_i32_1 = arith.constant 0 : i32
    return %c0_i32, %c0_i32_0 : i32, i32
  }
  func.func @transform_2(%arg0: i32) -> (i32, i32) {
    %c0_i32 = arith.constant 0 : i32
    %c0_i32_0 = arith.constant 0 : i32
    %c0_i32_1 = arith.constant 0 : i32
    return %c0_i32, %c0_i32_0 : i32, i32
  }
  func.func @transform_3(%arg0: i32) -> (i32, i32) {
    %c0_i32 = arith.constant 0 : i32
    %c0_i32_0 = arith.constant 0 : i32
    %c0_i32_1 = arith.constant 0 : i32
    return %c0_i32, %c0_i32_0 : i32, i32
  }
  func.func @transform_4(%arg0: i32) -> (i32, i32) {
    %c0_i32 = arith.constant 0 : i32
    %c0_i32_0 = arith.constant 0 : i32
    %c0_i32_1 = arith.constant 0 : i32
    return %c0_i32, %c0_i32_0 : i32, i32
  }
  func.func @transform_5(%arg0: i32) -> (i32, i32) {
    %c0_i32 = arith.constant 0 : i32
    %c0_i32_0 = arith.constant 0 : i32
    return %arg0, %c0_i32 : i32, i32
  }
}

</mosaic_0001>

<bundles_post_ra>
// kernel: tpu_custom_call.1
= control target key start
LH: loop header
LB: loop body
LE: loop exit
PB: predicated region body
PF: predicated region fallthrough
CT: control target
= control target key end

     0   :  { %6 = vsyncpa [#allocation3], 0  ;;  %s482_s0 = inlined_call_operand.hbm [shape: f32[8,128], index: 0, kind: input, shape index: {}]   ;;  %s483_s1 = inlined_call_operand.hbm [shape: f32[16,128], index: 1, kind: output, shape index: {}]  }
   0x1   :  { %7 = vsyncpa [#allocation4], 0 }
   0x2   :  { %9 = vsyncpa [#allocation4 + $0x1], 0  ;;  %s352_s6 = smov 0   ;;  %s354_s7 = smov 0  }
   0x3   :  { %s356_s8 = smov 0   ;;  %s358_s9 = smov 0  }
   0x4 LB: > { %s373_s10 = sadd.s32 4294967295, %s338_s9   ;;  %s184_s11 = sadd.s32 4294967294, %s338_s9   ;;  %s338_s9 = sphi %s358_s9, %s499_s9   ;;  %s334_s8 = sphi %s356_s8, %s498_s8   ;;  %s330_s7 = sphi %s354_s7, %s497_s7   ;;  %s326_s6 = sphi %s352_s6, %s496_s6  }
   0x5   : > { %s377_s12 = sadd.s32 1, %s338_s9   ;;  %s43_s13 = sadd.s32 1, %s334_s8 }
   0x6   : > { %s40_s14 = ssub.s32 %s338_s9, %s377_s12  ;;  %p53_p0 = scmp.ne.s32.totalorder %s334_s8, %s330_s7 }
   0x7   : > { %p41_p1 = scmp.eq.s32.totalorder %s40_s14, 0  ;;  %p54_p2 = scmp.eq.s32.totalorder %s373_s10, 1 }
   0x8   : > { %p59_p3 = scmp.ne.s32.totalorder %s330_s7, %s326_s6  ;;  %p60_p4 = scmp.eq.s32.totalorder %s184_s11, 1 }
   0x9   : > { %s388_s15 = scalar_select %p41_p1, %s334_s8, %s43_s13  }
   0xa   : > { %p390_p5 = por %p54_p2, %p53_p0  ;;  %p394_p6 = por %p60_p4, %p59_p3 }
   0xb   : > { %p185_p7 = scmp.ge.s32.totalorder %s338_s9, 1  ;;  %p67_p8 = scmp.lt.s32.totalorder %s338_s9, 3 }
   0xc   : > { %s487_s16 = scalar_select %p390_p5, 1, 0 }
   0xd   : > { %s488_s17 = scalar_select %p394_p6, 1, 0 }
   0xe   : > { %p484_p9 = scmp.eq.s32.totalorder %s373_s10, 0  ;;  %p401_p10 = pnand %p185_p7, %p67_p8 }
   0xf   : > { %s340_s19 = smov [#allocation2]   ;;  %s244_s24 = scalar_lea.hbm %s482_s0, 128 }
  0x10   : > { %s489_s18 = scalar_select %p401_p10, 1, 0 }
  0x11   : > { %s80_s20 = sshll.u32 %s340_s19, 4  ;;  %p200_p11 = pneg %p401_p10  ;;  %s81_s20 = int_to_ptr.vmem [resolvable:$true] %s80_s20 }
  0x12   : > { %p245_p13 = scmp.ne.s32.totalorder %s482_s0, %s244_s24  ;;  %p251_p3 = scmp.lt.u32.totalorder %s244_s24, %s482_s0 }
  0x13   : > { %p409_p12 = pnand %p484_p9, %p200_p11 }
  0x15   : > { %p246_p0 = pneg %p409_p12 }
  0x17   : > { %p247_p1 = pnand %p246_p0, %p245_p13 }
  0x19   : > { %p248_p2 = pneg %p247_p1 }
  0x1b   : > { %p253_p4 = pnand %p251_p3, %p248_p2 }
  0x1d   : > { %256 = shalt.err (!%p253_p4)
}
  0x1e   : > { %s257_s29 = scalar_lea.vmem %s81_s20, 128  ;;  %p265_p9 = scmp.lt.s32.totalorder %s81_s20, %s81_s20 }
  0x1f   : > { %p258_p7 = scmp.ne.s32.totalorder %s81_s20, %s257_s29  ;;  %p266_p6 = scmp.lt.s32.totalorder %s257_s29, %s257_s29 }
  0x21   : > { %p260_p8 = pnand %p258_p7, %p246_p0  ;;  %p267_p5 = por %p266_p6, %p265_p9 }
  0x23   : > { %p261_p11 = pneg %p260_p8 }
  0x25   : > { %p268_p10 = pnand %p267_p5, %p261_p11 }
  0x27   : > { %271 = shalt.err (!%p268_p10)
}
  0x28   : > { %203 = dma.hbm_to_vmem [thread:$0]  (!%p409_p12), %s482_s0, 128, %s81_s20, [#allocation3]  }
  0x29   : > { %p491_p13 = scmp.ne.s32.totalorder %s489_s18, 0 }
  0x2a   : > { %p492_p1 = scmp.eq.s32.totalorder (!%p491_p13), %s373_s10, 0 }
  0x2b   : > { %93 = sbr.rel (%p491_p13) target bundleno = 77 (0x4d), region = 24 }
  0x32   : > { %317 = dma.done.wait (%p492_p1), [#allocation3], 128   ;;  %p493_p0 = pmov %p492_p1 }
  0x33   : > { %s105_s3 = sand.u32 1, %s330_s7   ;;  %s191_s13 = sshll.u32 %s373_s10, 7  ;;  %v108_v0 = vld [vmem:[#allocation2] sm:$0xff] }
  0x34   : > { %319 = vsyncadd (%p493_p0), [#allocation3], 4294967168  ;;  %s189_s4 = sshll.u32 %s105_s3, 3  ;;  %v109_v1 = vadd.f32 1.0, %v108_v0  ;;  %s442_s19 = scalar_lea.hbm %s483_s1, %s191_s13 }
  0x35   : > { %s107_s5 = scalar_lea.vmem [#allocation5], %s189_s4  ;;  %s112_s20 = scalar_lea.sflag [#allocation4], %s105_s3 }
  0x36   : > { %s125_s11 = sshll.u32 %s107_s5, 4  ;;  %110 = vst [vmem:[%s107_s5] sm:$0xff] %v109_v1  ;;  %p494_p6 = scmp.ne.s32.totalorder %s487_s16, 0  ;;  %s437_s11 = int_to_ptr.vmem [resolvable:$true] %s125_s11 }
  0x37   : > { %s272_s21 = scalar_lea.vmem %s437_s11, 128  ;;  %s341_s10 = smov [#allocation5]  }
  0x38   : > { %p273_p5 = scmp.ne.s32.totalorder %s437_s11, %s272_s21  ;;  %s276_s22 = sshll.u32 %s341_s10, 4  ;;  %s277_s22 = int_to_ptr.vmem [resolvable:$false] %s276_s22 }
  0x39   : > { %s278_s23 = scalar_lea.vmem %s277_s22, 256  ;;  %p279_p12 = scmp.lt.s32.totalorder %s437_s11, %s277_s22 }
  0x3a   : > { %p274_p9 = pnand %p273_p5, %p494_p6  ;;  %p280_p2 = scmp.lt.s32.totalorder %s278_s23, %s272_s21 }
  0x3c   : > { %p275_p10 = pneg %p274_p9  ;;  %p281_p3 = por %p280_p2, %p279_p12 }
  0x3e   : > { %p282_p4 = pnand %p281_p3, %p275_p10 }
  0x40   : > { %285 = shalt.err (!%p282_p4)
}
  0x41   : > { %s286_s24 = scalar_lea.hbm %s442_s19, 128  ;;  %s290_s27 = scalar_lea.hbm %s483_s1, 256 }
  0x42   : > { %p287_p7 = scmp.ne.s32.totalorder %s442_s19, %s286_s24  ;;  %p291_p13 = scmp.lt.u32.totalorder %s442_s19, %s483_s1 }
  0x43   : > { %p292_p1 = scmp.lt.u32.totalorder %s290_s27, %s286_s24  ;;  %p294_p5 = scmp.lt.u32.totalorder %s286_s24, %s442_s19 }
  0x44   : > { %p288_p8 = pnand %p287_p7, %p494_p6 }
  0x45   : > { %p293_p0 = por %p292_p1, %p291_p13 }
  0x46   : > { %p289_p11 = pneg %p288_p8 }
  0x47   : > { %p295_p9 = por %p294_p5, %p293_p0 }
  0x49   : > { %p296_p10 = pnand %p295_p9, %p289_p11 }
  0x4b   : > { %299 = shalt.err (!%p296_p10)
}
  0x4c   : > { %198 = dma.vmem_to_hbm [thread:$0]  (%p494_p6), %s437_s11, 128, %s442_s19, %s112_s20  }
  0x4d PF: > { %p210_p12 = scmp.ge.s32.totalorder %s338_s9, 2  ;;  %s137_s30 = sand.u32 1, %s326_s6  }
  0x4e   : > { %p495_p2 = scmp.ne.s32.totalorder %s488_s17, 0  ;;  %s138_s2 = scalar_lea.sflag [#allocation4], %s137_s30 }
  0x50   : > { %p205_p3 = pnand %p210_p12, %p495_p2 }
  0x52   : > { %321 = dma.done.wait (!%p205_p3), %s138_s2, 128  }
  0x53   : > { %323 = vsyncadd (!%p205_p3), %s138_s2, 4294967168  ;;  %p12_p4 = scmp.ge.s32.totalorder %s377_s12, 4   ;;  %s496_s6 = smov %s330_s7 }
  0x54   : > { %s497_s7 = smov %s334_s8  ;;  %s498_s8 = smov %s388_s15 }
  0x55   : > { %s499_s9 = smov %s377_s12  ;;  %14 = sbr.rel (!%p12_p4) target bundleno = 4 (0x4), region = 61 }
  0x5c   :  { %143 = vsyncpa [#allocation3], 1 }
  0x5d   :  { %145 = vsyncpa [#allocation3 + $0x1], 1 }
  0x5e   :  { %146 = vsyncpa [#allocation4], 1 }
  0x5f   :  { %148 = vsyncpa [#allocation4 + $0x1], 1 }

// kernel: tpu_custom_call.1
= control target key start
LH: loop header
LB: loop body
LE: loop exit
PB: predicated region body
PF: predicated region fallthrough
CT: control target
= control target key end

     0   :  { %6 = vsyncpa [#allocation3], 0  ;;  %s482_s0 = inlined_call_operand.hbm [shape: f32[8,128], index: 0, kind: input, shape index: {}]   ;;  %s483_s1 = inlined_call_operand.hbm [shape: f32[16,128], index: 1, kind: output, shape index: {}]  }
   0x1   :  { %7 = vsyncpa [#allocation4], 0 }
   0x2   :  { %9 = vsyncpa [#allocation4 + $0x1], 0  ;;  %s352_s6 = smov 0   ;;  %s354_s7 = smov 0  }
   0x3   :  { %s356_s8 = smov 0   ;;  %s358_s9 = smov 0  }
   0x4 LB: > { %s373_s10 = sadd.s32 4294967295, %s338_s9   ;;  %s184_s11 = sadd.s32 4294967294, %s338_s9   ;;  %s338_s9 = sphi %s358_s9, %s499_s9   ;;  %s334_s8 = sphi %s356_s8, %s498_s8   ;;  %s330_s7 = sphi %s354_s7, %s497_s7   ;;  %s326_s6 = sphi %s352_s6, %s496_s6  }
   0x5   : > { %s377_s12 = sadd.s32 1, %s338_s9   ;;  %s43_s13 = sadd.s32 1, %s334_s8 }
   0x6   : > { %s40_s14 = ssub.s32 %s338_s9, %s377_s12  ;;  %p53_p0 = scmp.ne.s32.totalorder %s334_s8, %s330_s7 }
   0x7   : > { %p41_p1 = scmp.eq.s32.totalorder %s40_s14, 0  ;;  %p54_p2 = scmp.eq.s32.totalorder %s373_s10, 1 }
   0x8   : > { %p59_p3 = scmp.ne.s32.totalorder %s330_s7, %s326_s6  ;;  %p60_p4 = scmp.eq.s32.totalorder %s184_s11, 1 }
   0x9   : > { %s388_s15 = scalar_select %p41_p1, %s334_s8, %s43_s13  }
   0xa   : > { %p390_p5 = por %p54_p2, %p53_p0  ;;  %p394_p6 = por %p60_p4, %p59_p3 }
   0xb   : > { %p185_p7 = scmp.ge.s32.totalorder %s338_s9, 1  ;;  %p67_p8 = scmp.lt.s32.totalorder %s338_s9, 3 }
   0xc   : > { %s487_s16 = scalar_select %p390_p5, 1, 0 }
   0xd   : > { %s488_s17 = scalar_select %p394_p6, 1, 0 }
   0xe   : > { %p484_p9 = scmp.eq.s32.totalorder %s373_s10, 0  ;;  %p401_p10 = pnand %p185_p7, %p67_p8 }
   0xf   : > { %s340_s19 = smov [#allocation2]   ;;  %s244_s24 = scalar_lea.hbm %s482_s0, 128 }
  0x10   : > { %s489_s18 = scalar_select %p401_p10, 1, 0 }
  0x11   : > { %s80_s20 = sshll.u32 %s340_s19, 4  ;;  %p200_p11 = pneg %p401_p10  ;;  %s81_s20 = int_to_ptr.vmem [resolvable:$true] %s80_s20 }
  0x12   : > { %p245_p13 = scmp.ne.s32.totalorder %s482_s0, %s244_s24  ;;  %p251_p3 = scmp.lt.u32.totalorder %s244_s24, %s482_s0 }
  0x13   : > { %p409_p12 = pnand %p484_p9, %p200_p11 }
  0x15   : > { %p246_p0 = pneg %p409_p12 }
  0x17   : > { %p247_p1 = pnand %p246_p0, %p245_p13 }
  0x19   : > { %p248_p2 = pneg %p247_p1 }
  0x1b   : > { %p253_p4 = pnand %p251_p3, %p248_p2 }
  0x1d   : > { %256 = shalt.err (!%p253_p4)
}
  0x1e   : > { %s257_s29 = scalar_lea.vmem %s81_s20, 128  ;;  %p265_p9 = scmp.lt.s32.totalorder %s81_s20, %s81_s20 }
  0x1f   : > { %p258_p7 = scmp.ne.s32.totalorder %s81_s20, %s257_s29  ;;  %p266_p6 = scmp.lt.s32.totalorder %s257_s29, %s257_s29 }
  0x21   : > { %p260_p8 = pnand %p258_p7, %p246_p0  ;;  %p267_p5 = por %p266_p6, %p265_p9 }
  0x23   : > { %p261_p11 = pneg %p260_p8 }
  0x25   : > { %p268_p10 = pnand %p267_p5, %p261_p11 }
  0x27   : > { %271 = shalt.err (!%p268_p10)
}
  0x28   : > { %203 = dma.hbm_to_vmem [thread:$0]  (!%p409_p12), %s482_s0, 128, %s81_s20, [#allocation3]  }
  0x29   : > { %p491_p13 = scmp.ne.s32.totalorder %s489_s18, 0 }
  0x2a   : > { %p492_p1 = scmp.eq.s32.totalorder (!%p491_p13), %s373_s10, 0 }
  0x2b   : > { %93 = sbr.rel (%p491_p13) target bundleno = 77 (0x4d), region = 24 }
  0x32   : > { %317 = dma.done.wait (%p492_p1), [#allocation3], 128   ;;  %p493_p0 = pmov %p492_p1 }
  0x33   : > { %s105_s3 = sand.u32 1, %s330_s7   ;;  %s191_s13 = sshll.u32 %s373_s10, 7  ;;  %v108_v0 = vld [vmem:[#allocation2] sm:$0xff] }
  0x34   : > { %319 = vsyncadd (%p493_p0), [#allocation3], 4294967168  ;;  %s189_s4 = sshll.u32 %s105_s3, 3  ;;  %v109_v1 = vadd.f32 1.0, %v108_v0  ;;  %s442_s19 = scalar_lea.hbm %s483_s1, %s191_s13 }
  0x35   : > { %s107_s5 = scalar_lea.vmem [#allocation5], %s189_s4  ;;  %s112_s20 = scalar_lea.sflag [#allocation4], %s105_s3 }
  0x36   : > { %s125_s11 = sshll.u32 %s107_s5, 4  ;;  %110 = vst [vmem:[%s107_s5] sm:$0xff] %v109_v1  ;;  %p494_p6 = scmp.ne.s32.totalorder %s487_s16, 0  ;;  %s437_s11 = int_to_ptr.vmem [resolvable:$true] %s125_s11 }
  0x37   : > { %s272_s21 = scalar_lea.vmem %s437_s11, 128  ;;  %s341_s10 = smov [#allocation5]  }
  0x38   : > { %p273_p5 = scmp.ne.s32.totalorder %s437_s11, %s272_s21  ;;  %s276_s22 = sshll.u32 %s341_s10, 4  ;;  %s277_s22 = int_to_ptr.vmem [resolvable:$false] %s276_s22 }
  0x39   : > { %s278_s23 = scalar_lea.vmem %s277_s22, 256  ;;  %p279_p12 = scmp.lt.s32.totalorder %s437_s11, %s277_s22 }
  0x3a   : > { %p274_p9 = pnand %p273_p5, %p494_p6  ;;  %p280_p2 = scmp.lt.s32.totalorder %s278_s23, %s272_s21 }
  0x3c   : > { %p275_p10 = pneg %p274_p9  ;;  %p281_p3 = por %p280_p2, %p279_p12 }
  0x3e   : > { %p282_p4 = pnand %p281_p3, %p275_p10 }
  0x40   : > { %285 = shalt.err (!%p282_p4)
}
  0x41   : > { %s286_s24 = scalar_lea.hbm %s442_s19, 128  ;;  %s290_s27 = scalar_lea.hbm %s483_s1, 256 }
  0x42   : > { %p287_p7 = scmp.ne.s32.totalorder %s442_s19, %s286_s24  ;;  %p291_p13 = scmp.lt.u32.totalorder %s442_s19, %s483_s1 }
  0x43   : > { %p292_p1 = scmp.lt.u32.totalorder %s290_s27, %s286_s24  ;;  %p294_p5 = scmp.lt.u32.totalorder %s286_s24, %s442_s19 }
  0x44   : > { %p288_p8 = pnand %p287_p7, %p494_p6 }
  0x45   : > { %p293_p0 = por %p292_p1, %p291_p13 }
  0x46   : > { %p289_p11 = pneg %p288_p8 }
  0x47   : > { %p295_p9 = por %p294_p5, %p293_p0 }
  0x49   : > { %p296_p10 = pnand %p295_p9, %p289_p11 }
  0x4b   : > { %299 = shalt.err (!%p296_p10)
}
  0x4c   : > { %198 = dma.vmem_to_hbm [thread:$0]  (%p494_p6), %s437_s11, 128, %s442_s19, %s112_s20  }
  0x4d PF: > { %p210_p12 = scmp.ge.s32.totalorder %s338_s9, 2  ;;  %s137_s30 = sand.u32 1, %s326_s6  }
  0x4e   : > { %p495_p2 = scmp.ne.s32.totalorder %s488_s17, 0  ;;  %s138_s2 = scalar_lea.sflag [#allocation4], %s137_s30 }
  0x50   : > { %p205_p3 = pnand %p210_p12, %p495_p2 }
  0x52   : > { %321 = dma.done.wait (!%p205_p3), %s138_s2, 128  }
  0x53   : > { %323 = vsyncadd (!%p205_p3), %s138_s2, 4294967168  ;;  %p12_p4 = scmp.ge.s32.totalorder %s377_s12, 4   ;;  %s496_s6 = smov %s330_s7 }
  0x54   : > { %s497_s7 = smov %s334_s8  ;;  %s498_s8 = smov %s388_s15 }
  0x55   : > { %s499_s9 = smov %s377_s12  ;;  %14 = sbr.rel (!%p12_p4) target bundleno = 4 (0x4), region = 61 }
  0x5c   :  { %143 = vsyncpa [#allocation3], 1 }
  0x5d   :  { %145 = vsyncpa [#allocation3 + $0x1], 1 }
  0x5e   :  { %146 = vsyncpa [#allocation4], 1 }
  0x5f   :  { %148 = vsyncpa [#allocation4 + $0x1], 1 }

// kernel: tpu_custom_call.1
= control target key start
LH: loop header
LB: loop body
LE: loop exit
PB: predicated region body
PF: predicated region fallthrough
CT: control target
= control target key end

     0   :  { %10 = vsyncpa [#allocation3], 0  ;;  %s726_s0 = inlined_call_operand.hbm [shape: f32[16,128], index: 0, kind: input, shape index: {}]   ;;  %s727_s1 = inlined_call_operand.hbm [shape: bf16[128,256], index: 1, kind: input, shape index: {}]   ;;  %s728_s2 = inlined_call_operand.vmem [shape: f32[1,256], index: 2, kind: input, shape index: {}]   ;;  %s729_s3 = inlined_call_operand.hbm [shape: bf16[256,128], index: 3, kind: input, shape index: {}]   ;;  %s730_s4 = inlined_call_operand.vmem [shape: f32[1,128], index: 4, kind: input, shape index: {}]   ;;  %s731_s5 = inlined_call_operand.hbm [shape: f32[16,128], index: 5, kind: output, shape index: {}]  }
   0x1   :  { %11 = vsyncpa [#allocation6], 0 }
   0x2   :  { %12 = vsyncpa [#allocation4], 0  ;;  %s617_s18 = smov [#allocation5]   ;;  %s618_s20 = smov [#allocation2]  }
   0x3   :  { %s30_s19 = sshll.u32 %s617_s18, 4  ;;  %s18_s21 = sshll.u32 %s618_s20, 4  ;;  %s31_s19 = int_to_ptr.vmem [resolvable:$true] %s30_s19  ;;  %s656_s21 = int_to_ptr.vmem [resolvable:$true] %s18_s21 }
   0x4   :  { %s523_s24 = scalar_lea.hbm %s727_s1, 2048 }
   0x5   :  { %p524_p0 = scmp.ne.s32.totalorder %s727_s1, %s523_s24  ;;  %p527_p1 = scmp.lt.u32.totalorder %s523_s24, %s727_s1 }
   0x7   :  { %p529_p2 = pnand %p527_p1, %p524_p0 }
   0x9   :  { %532 = shalt.err (!%p529_p2)
}
   0xa   :  { %s533_s29 = scalar_lea.vmem %s31_s19, 2048  ;;  %p538_p4 = scmp.lt.s32.totalorder %s31_s19, %s31_s19 }
   0xb   :  { %p534_p3 = scmp.ne.s32.totalorder %s31_s19, %s533_s29  ;;  %p539_p5 = scmp.lt.s32.totalorder %s533_s29, %s533_s29 }
   0xd   :  { %p540_p6 = por %p539_p5, %p538_p4 }
   0xf   :  { %p541_p7 = pnand %p540_p6, %p534_p3 }
  0x11   :  { %544 = shalt.err (!%p541_p7)
}
  0x12   :  { %s619_s30 = smov 128   ;;  %s620_s6 = smov 8  }
  0x13   :  { %36 = dma.hbm_to_vmem [thread:$0]  %s727_s1, 2048, %s31_s19, [#allocation6], %s619_s30, %s619_s30, %s620_s6  }
  0x14   :  { %s545_s11 = scalar_lea.hbm %s726_s0, 256 }
  0x15   :  { %p546_p8 = scmp.ne.s32.totalorder %s726_s0, %s545_s11  ;;  %p549_p9 = scmp.lt.u32.totalorder %s545_s11, %s726_s0 }
  0x17   :  { %p551_p10 = pnand %p549_p9, %p546_p8 }
  0x19   :  { %554 = shalt.err (!%p551_p10)
}
  0x1a   :  { %s555_s16 = scalar_lea.vmem %s656_s21, 256  ;;  %p560_p12 = scmp.lt.s32.totalorder %s656_s21, %s656_s21 }
  0x1b   :  { %p556_p11 = scmp.ne.s32.totalorder %s656_s21, %s555_s16  ;;  %p561_p13 = scmp.lt.s32.totalorder %s555_s16, %s555_s16 }
  0x1d   :  { %p562_p0 = por %p561_p13, %p560_p12 }
  0x1f   :  { %p563_p1 = pnand %p562_p0, %p556_p11 }
  0x21   :  { %566 = shalt.err (!%p563_p1)
}
  0x22   :  { %24 = dma.hbm_to_vmem [thread:$0]  %s726_s0, 256, %s656_s21, [#allocation3], %s619_s30, %s619_s30, %s620_s6  }
  0x23   :  { %s621_s18 = smov [#allocation7]   ;;  %s567_s23 = scalar_lea.hbm %s729_s3, 2048 }
  0x24   :  { %s44_s19 = sshll.u32 %s621_s18, 4  ;;  %p568_p2 = scmp.ne.s32.totalorder %s729_s3, %s567_s23  ;;  %s45_s19 = int_to_ptr.vmem [resolvable:$true] %s44_s19 }
  0x25   :  { %p571_p3 = scmp.lt.u32.totalorder %s567_s23, %s729_s3 }
  0x27   :  { %p573_p4 = pnand %p571_p3, %p568_p2 }
  0x29   :  { %576 = shalt.err (!%p573_p4)
}
  0x2a   :  { %s577_s28 = scalar_lea.vmem %s45_s19, 2048  ;;  %p582_p6 = scmp.lt.s32.totalorder %s45_s19, %s45_s19 }
  0x2b   :  { %p578_p5 = scmp.ne.s32.totalorder %s45_s19, %s577_s28  ;;  %p583_p7 = scmp.lt.s32.totalorder %s577_s28, %s577_s28 }
  0x2d   :  { %p584_p8 = por %p583_p7, %p582_p6 }
  0x2f   :  { %p585_p9 = pnand %p584_p8, %p578_p5 }
  0x31   :  { %588 = shalt.err (!%p585_p9)
}
  0x32   :  { %s622_s0 = smov 64   ;;  %s623_s21 = smov 4  }
  0x33   :  { %50 = dma.hbm_to_vmem [thread:$0]  %s729_s3, 2048, %s45_s19, [#allocation6], %s622_s0, %s622_s0, %s623_s21  }
  0x34   :  { %611 = dma.done.wait [#allocation3], 256  }
  0x35   :  { %612 = vsyncadd [#allocation3], 4294967040 }
  0x36   :  { %613 = dma.done.wait [#allocation6], 4096  }
  0x37   :  { %614 = vsyncadd [#allocation6], 4294963200  ;;  %v624_v0 = vmov 0   ;;  %v483_v1 = vld [vmem:[#allocation5 + $0x4] ss:$8 sps:$4 sm:$0xff]   ;;  %v511_v16 = vld [vmem:[#allocation7 + $0x50] sm:$0xff]   ;;  %v84_v36 = vlaneseq }
  0x38   :  { %206 = vmatprep.mubr.bf16.mxu0 %v624_v0  ;;  %v485_v2 = vld [vmem:[#allocation5] ss:$8 sps:$4 sm:$0xff]   ;;  %174 = vmatprep.subr.bf16.mxu0 %v483_v1  ;;  %v486_v3 = vld [vmem:[#allocation5 + $0x14] ss:$8 sps:$4 sm:$0xff]   ;;  %v488_v4 = vld [vmem:[#allocation5 + $0x10] ss:$8 sps:$4 sm:$0xff]  }
  0x39   :  { %175 = vmatpush1.bf16.msra.mxu0 %v485_v2  ;;  %v489_v5 = vld [vmem:[#allocation5 + $0x24] ss:$8 sps:$4 sm:$0xff]   ;;  %v491_v6 = vld [vmem:[#allocation5 + $0x20] ss:$8 sps:$4 sm:$0xff]   ;;  %v492_v7 = vld [vmem:[#allocation5 + $0x34] ss:$8 sps:$4 sm:$0xff]  }
  0x3a   :  { %176 = vmatprep.subr.bf16.mxu0 %v486_v3  ;;  %v494_v8 = vld [vmem:[#allocation5 + $0x30] ss:$8 sps:$4 sm:$0xff]   ;;  %v495_v9 = vld [vmem:[#allocation5 + $0x44] ss:$8 sps:$4 sm:$0xff]   ;;  %v497_v11 = vld [vmem:[#allocation5 + $0x40] ss:$8 sps:$4 sm:$0xff]  }
  0x3b   :  { %v507_v10 = vld [vmem:[#allocation7 + $0x40] sm:$0xff]   ;;  %v498_v13 = vld [vmem:[#allocation5 + $0x54] ss:$8 sps:$4 sm:$0xff]   ;;  %v509_v14 = vld [vmem:[#allocation7 + $0x48] sm:$0xff]   ;;  %v85_v37 = vshrl.u32 %v84_v36, 7  ;;  %s625_s10 = smov [#allocation8]  }
  0x3c   :  { %v508_v12 = vld [vmem:[#allocation7] sm:$0xff]   ;;  %452 = vmatprep.subr.bf16.mxu1 %v507_v10  ;;  %v510_v15 = vld [vmem:[#allocation7 + $0x8] sm:$0xff]   ;;  %v500_v17 = vld [vmem:[#allocation5 + $0x50] ss:$8 sps:$4 sm:$0xff]   ;;  %s406_s11 = sshll.u32 %s625_s10, 4  ;;  %s407_s11 = int_to_ptr.vmem [resolvable:$true] %s406_s11 }
  0x3d   :  { %177 = vmatpush1.bf16.msra.mxu0 %v488_v4  ;;  %453 = vmatpush3.bf16.msra.mxu1 %v508_v12  ;;  %v501_v18 = vld [vmem:[#allocation5 + $0x64] ss:$8 sps:$4 sm:$0xff]   ;;  %v512_v19 = vld [vmem:[#allocation7 + $0x10] sm:$0xff]   ;;  %v513_v20 = vld [vmem:[#allocation7 + $0x58] sm:$0xff]   ;;  %v86_v38 = vsub.s32 0, %v85_v37  ;;  %v90_v40 = vsub.s32 1, %v85_v37  ;;  %p594_p11 = scmp.lt.s32.totalorder %s407_s11, %s407_s11 }
  0x3e   :  { %178 = vmatprep.subr.bf16.mxu0 %v489_v5  ;;  %454 = vmatprep.subr.bf16.mxu1 %v509_v14  ;;  %v503_v21 = vld [vmem:[#allocation5 + $0x60] ss:$8 sps:$4 sm:$0xff]   ;;  %v504_v22 = vld [vmem:[#allocation5 + $0x74] ss:$8 sps:$4 sm:$0xff]   ;;  %v506_v25 = vld [vmem:[#allocation5 + $0x70] ss:$8 sps:$4 sm:$0xff]  }
  0x3f   :  { %v514_v23 = vld [vmem:[#allocation7 + $0x18] sm:$0xff]   ;;  %v515_v24 = vld [vmem:[#allocation7 + $0x60] sm:$0xff]   ;;  %v63_v26 = vld [vmem:[#allocation2] sm:$0xff]  ;;  %s589_s12 = scalar_lea.vmem %s407_s11, 256 }
  0x40   :  { %v64_v27 = vld [vmem:[#allocation2 + $0x8] sm:$0xff]  ;;  %v516_v28 = vld [vmem:[#allocation7 + $0x20] sm:$0xff]   ;;  %v517_v29 = vld [vmem:[#allocation7 + $0x68] sm:$0xff]   ;;  %p590_p10 = scmp.ne.s32.totalorder %s407_s11, %s589_s12  ;;  %p595_p12 = scmp.lt.s32.totalorder %s589_s12, %s589_s12 }
  0x41   :  { %179 = vmatpush1.bf16.msra.mxu0 %v491_v6  ;;  %455 = vmatpush3.bf16.msra.mxu1 %v510_v15  ;;  %v65_v30 = vpack.c.bf16 %v64_v27, %v63_v26  ;;  %v518_v31 = vld [vmem:[#allocation7 + $0x28] sm:$0xff]   ;;  %v519_v32 = vld [vmem:[#allocation7 + $0x70] sm:$0xff]   ;;  %v521_v34 = vld [vmem:[#allocation7 + $0x78] sm:$0xff]  }
  0x42   :  { %180 = vmatprep.subr.bf16.mxu0 %v492_v7  ;;  %456 = vmatprep.subr.bf16.mxu1 %v511_v16  ;;  %v520_v33 = vld [vmem:[#allocation7 + $0x30] sm:$0xff]   ;;  %v522_v35 = vld [vmem:[#allocation7 + $0x38] sm:$0xff]   ;;  %p596_p13 = por %p595_p12, %p594_p11 }
  0x43   :  { %v82_v39 = vld [vmem:[%s728_s2] sm:$0x3] }
  0x44   :  { %v87_v41 = vrot.slane %v82_v39, %v86_v38  ;;  %v91_v42 = vrot.slane %v82_v39, %v90_v40  ;;  %v435_v58 = vld [vmem:[%s730_s4] ss:$0 sm:$0xff]  ;;  %p597_p0 = pnand %p596_p13, %p590_p10 }
  0x45   :  { %181 = vmatpush1.bf16.msra.mxu0 %v494_v8  ;;  %457 = vmatpush3.bf16.msra.mxu1 %v512_v19 }
  0x46   :  { %182 = vmatprep.subr.bf16.mxu0 %v495_v9  ;;  %458 = vmatprep.subr.bf16.mxu1 %v513_v20 }
  0x49   :  { %183 = vmatpush1.bf16.msra.mxu0 %v497_v11  ;;  %459 = vmatpush3.bf16.msra.mxu1 %v514_v23 }
  0x4a   :  { %184 = vmatprep.subr.bf16.mxu0 %v498_v13  ;;  %460 = vmatprep.subr.bf16.mxu1 %v515_v24 }
  0x4d   :  { %185 = vmatpush1.bf16.msra.mxu0 %v500_v17  ;;  %461 = vmatpush3.bf16.msra.mxu1 %v516_v28 }
  0x4e   :  { %186 = vmatprep.subr.bf16.mxu0 %v501_v18  ;;  %462 = vmatprep.subr.bf16.mxu1 %v517_v29 }
  0x51   :  { %187 = vmatpush1.bf16.msra.mxu0 %v503_v21  ;;  %463 = vmatpush3.bf16.msra.mxu1 %v518_v31 }
  0x52   :  { %188 = vmatprep.subr.bf16.mxu0 %v504_v22  ;;  %464 = vmatprep.subr.bf16.mxu1 %v519_v32 }
  0x55   :  { %189 = vmatpush1.bf16.msra.mxu0 %v506_v25  ;;  %465 = vmatpush3.bf16.msra.mxu1 %v520_v33 }
  0x56   :  { %466 = vmatprep.subr.bf16.mxu1 %v521_v34 }
  0x58   :  { %207 = vmatmul.mubr.bf16.vlgmr.msra.gmra.mrb[0].mxu0 %v65_v30 }
  0x59   :  { %467 = vmatpush3.bf16.msra.mxu1 %v522_v35 }
 0x12b   :  { %v208_v43 = vpop.f32.mrb[0].mxu0 }
 0x12c   :  { %v209_v44 = vadd.f32 %v208_v43, %v87_v41  ;;  %v210_v45 = vpop.f32.mrb[1].mxu0 }
 0x12d   :  { %v211_v46 = vadd.f32 %v210_v45, %v91_v42  ;;  %v212_v47 = vpop.f32.mrb[2].mxu0 }
 0x12e   :  { %v213_v48 = vadd.f32 %v212_v47, %v87_v41  ;;  %v214_v49 = vpop.f32.mrb[3].mxu0  ;;  %v217_v51 = vmax.f32 %v209_v44, 0.0 }
 0x12f   :  { %v215_v50 = vadd.f32 %v214_v49, %v91_v42  ;;  %v218_v53 = vmax.f32 %v211_v46, 0.0 }
 0x130   :  { %v219_v52 = vmax.f32 %v213_v48, 0.0 }
 0x131   :  { %v220_v54 = vmax.f32 %v215_v50, 0.0 }
 0x132   :  { %v221_v55 = vpack.c.bf16 %v219_v52, %v217_v51 }
 0x133   :  { %v222_v56 = vpack.c.bf16 %v220_v54, %v218_v53 }
 0x135   :  { %390 = vmatprep.mubr.bf16.mxu1 %v222_v56 }
 0x136   :  { %391 = vmatmul.mubr.bf16.vlgmr.msra.gmra.mrb[0].mxu1 %v221_v55 }
 0x209   :  { %v468_v57 = vpop.f32.mrb[0].mxu1 }
 0x20a   :  { %v469_v59 = vpop.f32.mrb[1].mxu1 }
 0x20b   :  { %v470_v60 = vadd.f32 %v469_v59, %v468_v57  ;;  %v471_v61 = vpop.f32.mrb[2].mxu1 }
 0x20c   :  { %v472_v62 = vpop.f32.mrb[3].mxu1 }
 0x20d   :  { %v393_v63 = vadd.f32 %v470_v60, %v435_v58  ;;  %v473_v0 = vadd.f32 %v472_v62, %v471_v61 }
 0x20f   :  { %399 = vst [vmem:[#allocation8] sm:$0xff] %v393_v63  ;;  %v396_v1 = vadd.f32 %v473_v0, %v435_v58 }
 0x211   :  { %400 = vst [vmem:[#allocation8 + $0x8] sm:$0xff] %v396_v1 }
 0x212   :  { %600 = shalt.err (!%p597_p0)
}
 0x213   :  { %s601_s14 = scalar_lea.hbm %s731_s5, 256 }
 0x214   :  { %p602_p1 = scmp.ne.s32.totalorder %s731_s5, %s601_s14  ;;  %p605_p2 = scmp.lt.u32.totalorder %s601_s14, %s731_s5 }
 0x216   :  { %p607_p3 = pnand %p605_p2, %p602_p1 }
 0x218   :  { %610 = shalt.err (!%p607_p3)
}
 0x219   :  { %412 = dma.vmem_to_hbm [thread:$0]  %s407_s11, 256, %s731_s5, [#allocation4], %s619_s30, %s619_s30, %s620_s6  }
 0x21a   :  { %615 = dma.done.wait [#allocation4], 256  }
 0x21b   :  { %616 = vsyncadd [#allocation4], 4294967040 }
 0x21c   :  { %416 = vsyncpa [#allocation3], 1 }
 0x21d   :  { %417 = vsyncpa [#allocation6], 1 }
 0x21e   :  { %418 = vsyncpa [#allocation4], 1 }

</bundles_post_ra>
